<compile_context>
chip_gen: v7x
topology: tpu7x:2x2x1
jax: 0.10.0
libtpu: 0.0.40
codegen_flags: <defaults>
</compile_context>

<pallas_src>
import math
from functools import partial

import jax
import jax.numpy as jnp
from jax.experimental import pallas as pl
from jax.experimental.pallas import tpu as pltpu

_VMEM_LIMIT = 48 * 1024 * 1024  # raise v5e's 16MiB default; within physical on v6e/v7x


def _choose_q_tile(S):
    if S <= 256:
        return S
    for t in (256, 128, 64, 32, 16, 8):
        if S % t == 0:
            return t
    return S


# --------------------------------------------------------------------------
# Kernel 1: fused QKV projection -> head-major bf16 q/k/v.
# --------------------------------------------------------------------------
def _qkv_kernel(x_ref, wqkv_ref, bqkv_ref, q_ref, k_ref, v_ref, *, num_heads, scale):
    x = x_ref[...]                                              # (TQ, E) f32
    qkv = jnp.dot(x.astype(jnp.bfloat16), wqkv_ref[...],
                  preferred_element_type=jnp.float32) + bqkv_ref[...]   # (TQ, 3E) f32
    E = x.shape[-1]
    Dh = E // num_heads
    for h in range(num_heads):                                  # cheap lane-slice writes
        q_ref[h] = (qkv[:, h * Dh:(h + 1) * Dh] * scale).astype(jnp.bfloat16)
        k_ref[h] = qkv[:, E + h * Dh: E + (h + 1) * Dh].astype(jnp.bfloat16)
        v_ref[h] = qkv[:, 2 * E + h * Dh: 2 * E + (h + 1) * Dh].astype(jnp.bfloat16)


def _qkv_projection(x, wqkv, bqkv, num_heads, scale, tq):
    N, S, E = x.shape
    Dh = E // num_heads
    grid = (N, S // tq)
    flops = 2 * N * S * E * 3 * E
    bytes_accessed = N * S * E * 4 + 3 * E * E * 2 + 3 * E * 4 + 3 * N * S * E * 2
    out_spec = pl.BlockSpec((None, num_heads, tq, Dh), lambda b, s: (b, 0, s, 0))
    q, k, v = pl.pallas_call(
        partial(_qkv_kernel, num_heads=num_heads, scale=scale),
        out_shape=(jax.ShapeDtypeStruct((N, num_heads, S, Dh), jnp.bfloat16),
                   jax.ShapeDtypeStruct((N, num_heads, S, Dh), jnp.bfloat16),
                   jax.ShapeDtypeStruct((N, num_heads, S, Dh), jnp.bfloat16)),
        grid=grid,
        in_specs=[
            pl.BlockSpec((None, tq, E), lambda b, s: (b, s, 0)),
            pl.BlockSpec((E, 3 * E), lambda b, s: (0, 0)),
            pl.BlockSpec((1, 3 * E), lambda b, s: (0, 0)),
        ],
        out_specs=[out_spec, out_spec, out_spec],
        compiler_params=pltpu.CompilerParams(
            dimension_semantics=("parallel", "parallel"),
            vmem_limit_bytes=_VMEM_LIMIT),
        cost_estimate=pl.CostEstimate(flops=flops, transcendentals=0,
                                      bytes_accessed=bytes_accessed),
    )(x, wqkv, bqkv)
    return q, k, v


# --------------------------------------------------------------------------
# Kernel 2: attention (batched heads) + out-proj + LN1 + FFN + LN2, query-tiled.
# --------------------------------------------------------------------------
def _attn_ffn_kernel(x_ref, q_ref, k_ref, v_ref, mask_ref,
                     wo_ref, bo_ref, g1_ref, be1_ref,
                     w1_ref, b1_ref, w2_ref, b2_ref,
                     g2_ref, be2_ref, out_ref):
    q = q_ref[...]                                   # (H, TQ, Dh) bf16, pre-scaled
    k = k_ref[...]                                   # (H, S, Dh)  bf16
    v = v_ref[...]                                   # (H, S, Dh)  bf16

    # scores + key-padding mask + softmax, all in f32
    s = jnp.einsum("hqd,hkd->hqk", q, k, preferred_element_type=jnp.float32)
    s = s + mask_ref[...][None, :, :] * (-1e9)       # (1,1,S) broadcast, f32
    s = s - jnp.max(s, axis=-1, keepdims=True)
    p = jnp.exp(s)
    p = p * pl.reciprocal(jnp.sum(p, axis=-1, keepdims=True), approx=True)

    o = jnp.einsum("hqk,hkd->hqd", p.astype(jnp.bfloat16), v,
                   preferred_element_type=jnp.float32)           # (H, TQ, Dh) f32
    H = o.shape[0]
    attn = jnp.concatenate([o[h] for h in range(H)], axis=-1).astype(jnp.bfloat16)
    attn = jnp.dot(attn, wo_ref[...], preferred_element_type=jnp.float32) + bo_ref[...]

    # residual + LayerNorm 1 (f32)
    x = x_ref[...]                                   # (TQ, E) f32
    h1 = x + attn
    mu = jnp.mean(h1, axis=-1, keepdims=True)
    var = jnp.mean((h1 - mu) ** 2, axis=-1, keepdims=True)
    h1 = (h1 - mu) * jax.lax.rsqrt(var + 1e-5) * g1_ref[...] + be1_ref[...]

    # feed-forward (bf16 MXU inputs, f32 accum)
    ff = jnp.dot(h1.astype(jnp.bfloat16), w1_ref[...],
                 preferred_element_type=jnp.float32) + b1_ref[...]
    ff = jnp.maximum(ff, 0.0)
    ff = jnp.dot(ff.astype(jnp.bfloat16), w2_ref[...],
                 preferred_element_type=jnp.float32) + b2_ref[...]

    # residual + LayerNorm 2 (f32)
    h2 = h1 + ff
    mu2 = jnp.mean(h2, axis=-1, keepdims=True)
    var2 = jnp.mean((h2 - mu2) ** 2, axis=-1, keepdims=True)
    out_ref[...] = (h2 - mu2) * jax.lax.rsqrt(var2 + 1e-5) * g2_ref[...] + be2_ref[...]


def _attn_ffn(x, q, k, v, mask_f, p, num_heads, tq):
    N, S, E = x.shape
    Dh = E // num_heads
    F = p["w1"].shape[1]
    grid = (N, S // tq)

    def bcast(shape):
        nd = len(shape)
        return pl.BlockSpec(shape, lambda b, s, _nd=nd: (0,) * _nd)

    in_specs = [
        pl.BlockSpec((None, tq, E), lambda b, s: (b, s, 0)),                  # x tile
        pl.BlockSpec((None, num_heads, tq, Dh), lambda b, s: (b, 0, s, 0)),   # q tile
        pl.BlockSpec((None, num_heads, S, Dh), lambda b, s: (b, 0, 0, 0)),    # k (full S)
        pl.BlockSpec((None, num_heads, S, Dh), lambda b, s: (b, 0, 0, 0)),    # v (full S)
        pl.BlockSpec((None, 1, S), lambda b, s: (b, 0, 0)),                   # key-pad mask
        bcast((E, E)), bcast((1, E)),     # wo, bo
        bcast((1, E)), bcast((1, E)),     # ln1 gamma, beta
        bcast((E, F)), bcast((1, F)),     # w1, b1
        bcast((F, E)), bcast((1, E)),     # w2, b2
        bcast((1, E)), bcast((1, E)),     # ln2 gamma, beta
    ]
    out_spec = pl.BlockSpec((None, tq, E), lambda b, s: (b, s, 0))

    flops = 4 * N * S * S * E + 2 * N * S * E * E + 4 * N * S * E * F
    transcendentals = N * num_heads * S * S
    bytes_accessed = (N * S * E * 4 + 3 * N * S * E * 2 + N * S * 4
                      + (E * E + 2 * E * F) * 2 + (6 * E + F) * 4 + N * S * E * 4)

    return pl.pallas_call(
        _attn_ffn_kernel,
        out_shape=jax.ShapeDtypeStruct((N, S, E), jnp.float32),
        grid=grid,
        in_specs=in_specs,
        out_specs=out_spec,
        compiler_params=pltpu.CompilerParams(
            dimension_semantics=("parallel", "parallel"),
            vmem_limit_bytes=_VMEM_LIMIT),
        cost_estimate=pl.CostEstimate(flops=flops, transcendentals=transcendentals,
                                      bytes_accessed=bytes_accessed),
    )(x, q, k, v, mask_f,
      p["wo"], p["bo"], p["g1"], p["be1"],
      p["w1"], p["b1"], p["w2"], p["b2"], p["g2"], p["be2"])


# --------------------------------------------------------------------------
# Full module forward: positional embedding add (glue) + L encoder layers.
# --------------------------------------------------------------------------
def transformer_encoder_forward(src, src_key_padding_mask, params):
    """src: (S, N, E) f32; src_key_padding_mask: (S, N) bool (True = pad)."""
    S, N, E = src.shape
    H = params["num_heads"]
    Dh = E // H
    scale = 1.0 / math.sqrt(Dh)
    tq = _choose_q_tile(S)

    pos = params["pos_embedding"][:S]                       # Embedding(arange(S))
    x = jnp.transpose(src + pos[:, None, :], (1, 0, 2))     # (N, S, E)
    mask_f = jnp.transpose(src_key_padding_mask, (1, 0)).astype(jnp.float32)[:, None, :]
    # TODO(synk): dropout layers are identity here (inference-mode semantics).
    for layer in params["layers"]:
        q, k, v = _qkv_projection(x, layer["wqkv"], layer["bqkv"], H, scale, tq)
        x = _attn_ffn(x, q, k, v, mask_f, layer, H, tq)
    return jnp.transpose(x, (1, 0, 2))                      # back to (S, N, E)


# --------------------------------------------------------------------------
# Deterministic parameter init (fused QKV weight, matmul weights stored bf16).
# --------------------------------------------------------------------------
def init_params(key, input_dim, num_heads, hidden_dim, num_layers):
    E, F = input_dim, hidden_dim
    keys = jax.random.split(key, num_layers + 1)
    pos = jax.random.normal(keys[0], (1000, E), jnp.float32) * 0.02
    layers = []
    s_e = 1.0 / math.sqrt(E)
    s_f = 1.0 / math.sqrt(F)

    def u(k, shape, s):
        return jax.random.uniform(k, shape, jnp.float32, -s, s)

    for i in range(num_layers):
        ks = jax.random.split(keys[i + 1], 4)
        layers.append(dict(
            wqkv=u(ks[0], (E, 3 * E), s_e).astype(jnp.bfloat16),
            bqkv=jnp.zeros((1, 3 * E), jnp.float32),
            wo=u(ks[1], (E, E), s_e).astype(jnp.bfloat16),
            bo=jnp.zeros((1, E), jnp.float32),
            g1=jnp.ones((1, E), jnp.float32), be1=jnp.zeros((1, E), jnp.float32),
            w1=u(ks[2], (E, F), s_e).astype(jnp.bfloat16),
            b1=jnp.zeros((1, F), jnp.float32),
            w2=u(ks[3], (F, E), s_f).astype(jnp.bfloat16),
            b2=jnp.zeros((1, E), jnp.float32),
            g2=jnp.ones((1, E), jnp.float32), be2=jnp.zeros((1, E), jnp.float32),
        ))
    return dict(pos_embedding=pos, layers=layers, num_heads=num_heads)


# --------------------------------------------------------------------------
# Pure-JAX reference (same math, same bf16 matmul casts) for a sanity check.
# --------------------------------------------------------------------------
def _layernorm(x, g, b, eps=1e-5):
    mu = jnp.mean(x, axis=-1, keepdims=True)
    var = jnp.mean((x - mu) ** 2, axis=-1, keepdims=True)
    return (x - mu) * jax.lax.rsqrt(var + eps) * g + b


def ref_forward(src, src_key_padding_mask, params):
    S, N, E = src.shape
    H = params["num_heads"]
    Dh = E // H
    scale = 1.0 / math.sqrt(Dh)
    bf = jnp.bfloat16

    def mm(a, b):
        return jnp.dot(a.astype(bf), b.astype(bf), preferred_element_type=jnp.float32)

    x = jnp.transpose(src + params["pos_embedding"][:S][:, None, :], (1, 0, 2))  # (N,S,E)
    km = jnp.transpose(src_key_padding_mask, (1, 0)).astype(jnp.float32)
    for p in params["layers"]:
        qkv = (mm(x.reshape(N * S, E), p["wqkv"]) + p["bqkv"]).reshape(N, S, 3, H, Dh)
        qh = (qkv[:, :, 0] * scale).astype(bf)
        kh = qkv[:, :, 1].astype(bf)
        vh = qkv[:, :, 2].astype(bf)
        s = jnp.einsum("nqhd,nkhd->nhqk", qh, kh, preferred_element_type=jnp.float32)
        s = s + km[:, None, None, :] * (-1e9)
        s = s - jnp.max(s, axis=-1, keepdims=True)
        pr = jnp.exp(s)
        pr = pr / jnp.sum(pr, axis=-1, keepdims=True)
        o = jnp.einsum("nhqk,nkhd->nqhd", pr.astype(bf), vh,
                       preferred_element_type=jnp.float32).reshape(N, S, E)
        o = mm(o, p["wo"]) + p["bo"]
        h1 = _layernorm(x + o, p["g1"], p["be1"])
        ff = jnp.maximum(mm(h1, p["w1"]) + p["b1"], 0.0)
        ff = mm(ff, p["w2"]) + p["b2"]
        x = _layernorm(h1 + ff, p["g2"], p["be2"])
    return jnp.transpose(x, (1, 0, 2))


if __name__ == "__main__":
    S, N, E, H, F, L = 8, 2, 32, 4, 64, 2       # seq, batch, d_model, heads, ffn, layers

    key = jax.random.PRNGKey(0)
    kp, ksrc = jax.random.split(key)
    params = init_params(kp, E, H, F, L)

    src = jax.random.normal(ksrc, (S, N, E), jnp.float32)
    # key padding mask (S, N): pad the last 2 positions of batch element 1
    src_key_padding_mask = jnp.zeros((S, N), dtype=bool).at[S - 2:, 1].set(True)

    out = transformer_encoder_forward(src, src_key_padding_mask, params)
    out = jax.block_until_ready(out)

    ref = ref_forward(src, src_key_padding_mask, params)
    assert out.shape == (S, N, E)
    max_err = float(jnp.max(jnp.abs(out - ref)))
    assert jnp.allclose(out, ref, atol=2e-2, rtol=2e-2), (
        f"mismatch vs pure-JAX reference (max abs err {max_err})")
    print("KERNEL_OK")
</pallas_src>

<mosaic_0001>
module attributes {stable_mosaic.version = 11 : i64} {
  func.func @_qkv_kernel(%arg0: i32, %arg1: i32, %arg2: memref<1x8x32xf32, #tpu.memory_space<vmem>>, %arg3: memref<32x96xbf16, #tpu.memory_space<vmem>>, %arg4: memref<1x96xf32, #tpu.memory_space<vmem>>, %arg5: memref<1x4x8x8xbf16, #tpu.memory_space<vmem>>, %arg6: memref<1x4x8x8xbf16, #tpu.memory_space<vmem>>, %arg7: memref<1x4x8x8xbf16, #tpu.memory_space<vmem>>) attributes {dimension_semantics = [#tpu.dimension_semantics<parallel>, #tpu.dimension_semantics<parallel>], iteration_bounds = array<i64: 2, 1>, scalar_prefetch = 0 : i64, scratch_operands = 0 : i64, tpu.core_type = #tpu.core_type<tc>, window_params = [{transform_indices = @transform_0, window_bounds = array<i64: 1, 8, 32>}, {pipeline_mode = #tpu.pipeline_mode<synchronous>, transform_indices = @transform_1, window_bounds = array<i64: 32, 96>}, {pipeline_mode = #tpu.pipeline_mode<synchronous>, transform_indices = @transform_2, window_bounds = array<i64: 1, 96>}, {transform_indices = @transform_3, window_bounds = array<i64: 1, 4, 8, 8>}, {transform_indices = @transform_4, window_bounds = array<i64: 1, 4, 8, 8>}, {transform_indices = @transform_5, window_bounds = array<i64: 1, 4, 8, 8>}]} {
    %c0 = arith.constant 0 : index
    %c0_0 = arith.constant 0 : index
    %c0_1 = arith.constant 0 : index
    %0 = vector.load %arg2[%c0, %c0_0, %c0_1] : memref<1x8x32xf32, #tpu.memory_space<vmem>>, vector<1x8x32xf32>
    %1 = vector.shape_cast %0 : vector<1x8x32xf32> to vector<8x32xf32>
    %2 = arith.truncf %1 : vector<8x32xf32> to vector<8x32xbf16>
    %c0_2 = arith.constant 0 : index
    %c0_3 = arith.constant 0 : index
    %3 = vector.load %arg3[%c0_2, %c0_3] : memref<32x96xbf16, #tpu.memory_space<vmem>>, vector<32x96xbf16>
    %cst = arith.constant dense<0.000000e+00> : vector<8x96xf32>
    %4 = tpu.matmul %2, %3, %cst {dimension_numbers = #tpu.dot_dimension_numbers<[1], [0], [0], [1], [0, 0, 1, 1], [], []>} : vector<8x32xbf16>, vector<32x96xbf16>, vector<8x96xf32> -> vector<8x96xf32>
    %c0_4 = arith.constant 0 : index
    %c0_5 = arith.constant 0 : index
    %5 = vector.load %arg4[%c0_4, %c0_5] : memref<1x96xf32, #tpu.memory_space<vmem>>, vector<1x96xf32>
    %6 = vector.broadcast %5 : vector<1x96xf32> to vector<8x96xf32>
    %7 = arith.addf %4, %6 : vector<8x96xf32>
    %8 = vector.extract_strided_slice %7 {offsets = [0, 0], sizes = [8, 8], strides = [1, 1]} : vector<8x96xf32> to vector<8x8xf32>
    %cst_6 = arith.constant 0.353553385 : f32
    %9 = vector.broadcast %cst_6 : f32 to vector<8x8xf32>
    %10 = arith.mulf %8, %9 : vector<8x8xf32>
    %11 = arith.truncf %10 : vector<8x8xf32> to vector<8x8xbf16>
    %c0_7 = arith.constant 0 : index
    %c0_8 = arith.constant 0 : index
    %c0_9 = arith.constant 0 : index
    %c0_10 = arith.constant 0 : index
    %12 = vector.load %arg5[%c0_7, %c0_8, %c0_9, %c0_10] : memref<1x4x8x8xbf16, #tpu.memory_space<vmem>>, vector<1x1x8x8xbf16>
    %13 = vector.shape_cast %12 : vector<1x1x8x8xbf16> to vector<8x8xbf16>
    %14 = vector.shape_cast %11 : vector<8x8xbf16> to vector<1x1x8x8xbf16>
    tpu.vector_store %arg5[%c0_7, %c0_8, %c0_9, %c0_10], %14 {strides = array<i32>} : memref<1x4x8x8xbf16, #tpu.memory_space<vmem>>, vector<1x1x8x8xbf16>,
    %15 = vector.extract_strided_slice %7 {offsets = [0, 32], sizes = [8, 8], strides = [1, 1]} : vector<8x96xf32> to vector<8x8xf32>
    %16 = arith.truncf %15 : vector<8x8xf32> to vector<8x8xbf16>
    %c0_11 = arith.constant 0 : index
    %c0_12 = arith.constant 0 : index
    %c0_13 = arith.constant 0 : index
    %c0_14 = arith.constant 0 : index
    %17 = vector.load %arg6[%c0_11, %c0_12, %c0_13, %c0_14] : memref<1x4x8x8xbf16, #tpu.memory_space<vmem>>, vector<1x1x8x8xbf16>
    %18 = vector.shape_cast %17 : vector<1x1x8x8xbf16> to vector<8x8xbf16>
    %19 = vector.shape_cast %16 : vector<8x8xbf16> to vector<1x1x8x8xbf16>
    tpu.vector_store %arg6[%c0_11, %c0_12, %c0_13, %c0_14], %19 {strides = array<i32>} : memref<1x4x8x8xbf16, #tpu.memory_space<vmem>>, vector<1x1x8x8xbf16>,
    %20 = vector.extract_strided_slice %7 {offsets = [0, 64], sizes = [8, 8], strides = [1, 1]} : vector<8x96xf32> to vector<8x8xf32>
    %21 = arith.truncf %20 : vector<8x8xf32> to vector<8x8xbf16>
    %c0_15 = arith.constant 0 : index
    %c0_16 = arith.constant 0 : index
    %c0_17 = arith.constant 0 : index
    %c0_18 = arith.constant 0 : index
    %22 = vector.load %arg7[%c0_15, %c0_16, %c0_17, %c0_18] : memref<1x4x8x8xbf16, #tpu.memory_space<vmem>>, vector<1x1x8x8xbf16>
    %23 = vector.shape_cast %22 : vector<1x1x8x8xbf16> to vector<8x8xbf16>
    %24 = vector.shape_cast %21 : vector<8x8xbf16> to vector<1x1x8x8xbf16>
    tpu.vector_store %arg7[%c0_15, %c0_16, %c0_17, %c0_18], %24 {strides = array<i32>} : memref<1x4x8x8xbf16, #tpu.memory_space<vmem>>, vector<1x1x8x8xbf16>,
    %25 = vector.extract_strided_slice %7 {offsets = [0, 8], sizes = [8, 8], strides = [1, 1]} : vector<8x96xf32> to vector<8x8xf32>
    %cst_19 = arith.constant 0.353553385 : f32
    %26 = vector.broadcast %cst_19 : f32 to vector<8x8xf32>
    %27 = arith.mulf %25, %26 : vector<8x8xf32>
    %28 = arith.truncf %27 : vector<8x8xf32> to vector<8x8xbf16>
    %c0_20 = arith.constant 0 : index
    %c1 = arith.constant 1 : index
    %c0_21 = arith.constant 0 : index
    %c0_22 = arith.constant 0 : index
    %29 = vector.load %arg5[%c0_20, %c1, %c0_21, %c0_22] : memref<1x4x8x8xbf16, #tpu.memory_space<vmem>>, vector<1x1x8x8xbf16>
    %30 = vector.shape_cast %29 : vector<1x1x8x8xbf16> to vector<8x8xbf16>
    %31 = vector.shape_cast %28 : vector<8x8xbf16> to vector<1x1x8x8xbf16>
    tpu.vector_store %arg5[%c0_20, %c1, %c0_21, %c0_22], %31 {strides = array<i32>} : memref<1x4x8x8xbf16, #tpu.memory_space<vmem>>, vector<1x1x8x8xbf16>,
    %32 = vector.extract_strided_slice %7 {offsets = [0, 40], sizes = [8, 8], strides = [1, 1]} : vector<8x96xf32> to vector<8x8xf32>
    %33 = arith.truncf %32 : vector<8x8xf32> to vector<8x8xbf16>
    %c0_23 = arith.constant 0 : index
    %c1_24 = arith.constant 1 : index
    %c0_25 = arith.constant 0 : index
    %c0_26 = arith.constant 0 : index
    %34 = vector.load %arg6[%c0_23, %c1_24, %c0_25, %c0_26] : memref<1x4x8x8xbf16, #tpu.memory_space<vmem>>, vector<1x1x8x8xbf16>
    %35 = vector.shape_cast %34 : vector<1x1x8x8xbf16> to vector<8x8xbf16>
    %36 = vector.shape_cast %33 : vector<8x8xbf16> to vector<1x1x8x8xbf16>
    tpu.vector_store %arg6[%c0_23, %c1_24, %c0_25, %c0_26], %36 {strides = array<i32>} : memref<1x4x8x8xbf16, #tpu.memory_space<vmem>>, vector<1x1x8x8xbf16>,
    %37 = vector.extract_strided_slice %7 {offsets = [0, 72], sizes = [8, 8], strides = [1, 1]} : vector<8x96xf32> to vector<8x8xf32>
    %38 = arith.truncf %37 : vector<8x8xf32> to vector<8x8xbf16>
    %c0_27 = arith.constant 0 : index
    %c1_28 = arith.constant 1 : index
    %c0_29 = arith.constant 0 : index
    %c0_30 = arith.constant 0 : index
    %39 = vector.load %arg7[%c0_27, %c1_28, %c0_29, %c0_30] : memref<1x4x8x8xbf16, #tpu.memory_space<vmem>>, vector<1x1x8x8xbf16>
    %40 = vector.shape_cast %39 : vector<1x1x8x8xbf16> to vector<8x8xbf16>
    %41 = vector.shape_cast %38 : vector<8x8xbf16> to vector<1x1x8x8xbf16>
    tpu.vector_store %arg7[%c0_27, %c1_28, %c0_29, %c0_30], %41 {strides = array<i32>} : memref<1x4x8x8xbf16, #tpu.memory_space<vmem>>, vector<1x1x8x8xbf16>,
    %42 = vector.extract_strided_slice %7 {offsets = [0, 16], sizes = [8, 8], strides = [1, 1]} : vector<8x96xf32> to vector<8x8xf32>
    %cst_31 = arith.constant 0.353553385 : f32
    %43 = vector.broadcast %cst_31 : f32 to vector<8x8xf32>
    %44 = arith.mulf %42, %43 : vector<8x8xf32>
    %45 = arith.truncf %44 : vector<8x8xf32> to vector<8x8xbf16>
    %c0_32 = arith.constant 0 : index
    %c2 = arith.constant 2 : index
    %c0_33 = arith.constant 0 : index
    %c0_34 = arith.constant 0 : index
    %46 = vector.load %arg5[%c0_32, %c2, %c0_33, %c0_34] : memref<1x4x8x8xbf16, #tpu.memory_space<vmem>>, vector<1x1x8x8xbf16>
    %47 = vector.shape_cast %46 : vector<1x1x8x8xbf16> to vector<8x8xbf16>
    %48 = vector.shape_cast %45 : vector<8x8xbf16> to vector<1x1x8x8xbf16>
    tpu.vector_store %arg5[%c0_32, %c2, %c0_33, %c0_34], %48 {strides = array<i32>} : memref<1x4x8x8xbf16, #tpu.memory_space<vmem>>, vector<1x1x8x8xbf16>,
    %49 = vector.extract_strided_slice %7 {offsets = [0, 48], sizes = [8, 8], strides = [1, 1]} : vector<8x96xf32> to vector<8x8xf32>
    %50 = arith.truncf %49 : vector<8x8xf32> to vector<8x8xbf16>
    %c0_35 = arith.constant 0 : index
    %c2_36 = arith.constant 2 : index
    %c0_37 = arith.constant 0 : index
    %c0_38 = arith.constant 0 : index
    %51 = vector.load %arg6[%c0_35, %c2_36, %c0_37, %c0_38] : memref<1x4x8x8xbf16, #tpu.memory_space<vmem>>, vector<1x1x8x8xbf16>
    %52 = vector.shape_cast %51 : vector<1x1x8x8xbf16> to vector<8x8xbf16>
    %53 = vector.shape_cast %50 : vector<8x8xbf16> to vector<1x1x8x8xbf16>
    tpu.vector_store %arg6[%c0_35, %c2_36, %c0_37, %c0_38], %53 {strides = array<i32>} : memref<1x4x8x8xbf16, #tpu.memory_space<vmem>>, vector<1x1x8x8xbf16>,
    %54 = vector.extract_strided_slice %7 {offsets = [0, 80], sizes = [8, 8], strides = [1, 1]} : vector<8x96xf32> to vector<8x8xf32>
    %55 = arith.truncf %54 : vector<8x8xf32> to vector<8x8xbf16>
    %c0_39 = arith.constant 0 : index
    %c2_40 = arith.constant 2 : index
    %c0_41 = arith.constant 0 : index
    %c0_42 = arith.constant 0 : index
    %56 = vector.load %arg7[%c0_39, %c2_40, %c0_41, %c0_42] : memref<1x4x8x8xbf16, #tpu.memory_space<vmem>>, vector<1x1x8x8xbf16>
    %57 = vector.shape_cast %56 : vector<1x1x8x8xbf16> to vector<8x8xbf16>
    %58 = vector.shape_cast %55 : vector<8x8xbf16> to vector<1x1x8x8xbf16>
    tpu.vector_store %arg7[%c0_39, %c2_40, %c0_41, %c0_42], %58 {strides = array<i32>} : memref<1x4x8x8xbf16, #tpu.memory_space<vmem>>, vector<1x1x8x8xbf16>,
    %59 = vector.extract_strided_slice %7 {offsets = [0, 24], sizes = [8, 8], strides = [1, 1]} : vector<8x96xf32> to vector<8x8xf32>
    %cst_43 = arith.constant 0.353553385 : f32
    %60 = vector.broadcast %cst_43 : f32 to vector<8x8xf32>
    %61 = arith.mulf %59, %60 : vector<8x8xf32>
    %62 = arith.truncf %61 : vector<8x8xf32> to vector<8x8xbf16>
    %c0_44 = arith.constant 0 : index
    %c3 = arith.constant 3 : index
    %c0_45 = arith.constant 0 : index
    %c0_46 = arith.constant 0 : index
    %63 = vector.load %arg5[%c0_44, %c3, %c0_45, %c0_46] : memref<1x4x8x8xbf16, #tpu.memory_space<vmem>>, vector<1x1x8x8xbf16>
    %64 = vector.shape_cast %63 : vector<1x1x8x8xbf16> to vector<8x8xbf16>
    %65 = vector.shape_cast %62 : vector<8x8xbf16> to vector<1x1x8x8xbf16>
    tpu.vector_store %arg5[%c0_44, %c3, %c0_45, %c0_46], %65 {strides = array<i32>} : memref<1x4x8x8xbf16, #tpu.memory_space<vmem>>, vector<1x1x8x8xbf16>,
    %66 = vector.extract_strided_slice %7 {offsets = [0, 56], sizes = [8, 8], strides = [1, 1]} : vector<8x96xf32> to vector<8x8xf32>
    %67 = arith.truncf %66 : vector<8x8xf32> to vector<8x8xbf16>
    %c0_47 = arith.constant 0 : index
    %c3_48 = arith.constant 3 : index
    %c0_49 = arith.constant 0 : index
    %c0_50 = arith.constant 0 : index
    %68 = vector.load %arg6[%c0_47, %c3_48, %c0_49, %c0_50] : memref<1x4x8x8xbf16, #tpu.memory_space<vmem>>, vector<1x1x8x8xbf16>
    %69 = vector.shape_cast %68 : vector<1x1x8x8xbf16> to vector<8x8xbf16>
    %70 = vector.shape_cast %67 : vector<8x8xbf16> to vector<1x1x8x8xbf16>
    tpu.vector_store %arg6[%c0_47, %c3_48, %c0_49, %c0_50], %70 {strides = array<i32>} : memref<1x4x8x8xbf16, #tpu.memory_space<vmem>>, vector<1x1x8x8xbf16>,
    %71 = vector.extract_strided_slice %7 {offsets = [0, 88], sizes = [8, 8], strides = [1, 1]} : vector<8x96xf32> to vector<8x8xf32>
    %72 = arith.truncf %71 : vector<8x8xf32> to vector<8x8xbf16>
    %c0_51 = arith.constant 0 : index
    %c3_52 = arith.constant 3 : index
    %c0_53 = arith.constant 0 : index
    %c0_54 = arith.constant 0 : index
    %73 = vector.load %arg7[%c0_51, %c3_52, %c0_53, %c0_54] : memref<1x4x8x8xbf16, #tpu.memory_space<vmem>>, vector<1x1x8x8xbf16>
    %74 = vector.shape_cast %73 : vector<1x1x8x8xbf16> to vector<8x8xbf16>
    %75 = vector.shape_cast %72 : vector<8x8xbf16> to vector<1x1x8x8xbf16>
    tpu.vector_store %arg7[%c0_51, %c3_52, %c0_53, %c0_54], %75 {strides = array<i32>} : memref<1x4x8x8xbf16, #tpu.memory_space<vmem>>, vector<1x1x8x8xbf16>,
    return
  }
  func.func @transform_0(%arg0: i32, %arg1: i32) -> (i32, i32, i32) {
    %c0_i32 = arith.constant 0 : i32
    %c0_i32_0 = arith.constant 0 : i32
    return %arg0, %arg1, %c0_i32 : i32, i32, i32
  }
  func.func @transform_1(%arg0: i32, %arg1: i32) -> (i32, i32) {
    %c0_i32 = arith.constant 0 : i32
    %c0_i32_0 = arith.constant 0 : i32
    %c0_i32_1 = arith.constant 0 : i32
    return %c0_i32, %c0_i32_0 : i32, i32
  }
  func.func @transform_2(%arg0: i32, %arg1: i32) -> (i32, i32) {
    %c0_i32 = arith.constant 0 : i32
    %c0_i32_0 = arith.constant 0 : i32
    %c0_i32_1 = arith.constant 0 : i32
    return %c0_i32, %c0_i32_0 : i32, i32
  }
  func.func @transform_3(%arg0: i32, %arg1: i32) -> (i32, i32, i32, i32) {
    %c0_i32 = arith.constant 0 : i32
    %c0_i32_0 = arith.constant 0 : i32
    %c0_i32_1 = arith.constant 0 : i32
    return %arg0, %c0_i32, %arg1, %c0_i32_0 : i32, i32, i32, i32
  }
  func.func @transform_4(%arg0: i32, %arg1: i32) -> (i32, i32, i32, i32) {
    %c0_i32 = arith.constant 0 : i32
    %c0_i32_0 = arith.constant 0 : i32
    %c0_i32_1 = arith.constant 0 : i32
    return %arg0, %c0_i32, %arg1, %c0_i32_0 : i32, i32, i32, i32
  }
  func.func @transform_5(%arg0: i32, %arg1: i32) -> (i32, i32, i32, i32) {
    %c0_i32 = arith.constant 0 : i32
    %c0_i32_0 = arith.constant 0 : i32
    %c0_i32_1 = arith.constant 0 : i32
    return %arg0, %c0_i32, %arg1, %c0_i32_0 : i32, i32, i32, i32
  }
}

</mosaic_0001>

<bundles_post_ra>
// kernel: tpu_custom_call.1
= control target key start
LH: loop header
LB: loop body
LE: loop exit
PB: predicated region body
PF: predicated region fallthrough
CT: control target
= control target key end

     0   :  { %11 = vsyncpa [#allocation3], 0  ;;  %s1388_s0 = inlined_call_operand.hbm [shape: f32[2,8,32], index: 0, kind: input, shape index: {}]   ;;  %s1389_s1 = inlined_call_operand.hbm [shape: bf16[32,96], index: 1, kind: input, shape index: {}]   ;;  %s1390_s2 = inlined_call_operand.vmem [shape: f32[1,96], index: 2, kind: input, shape index: {}]   ;;  %s1391_s3 = inlined_call_operand.hbm [shape: bf16[2,4,8,8], index: 3, kind: output, shape index: {0}]   ;;  %s1392_s4 = inlined_call_operand.hbm [shape: bf16[2,4,8,8], index: 4, kind: output, shape index: {1}]   ;;  %s1393_s5 = inlined_call_operand.hbm [shape: bf16[2,4,8,8], index: 5, kind: output, shape index: {2}]  }
   0x1   :  { %13 = vsyncpa [#allocation3 + $0x1], 0 }
   0x2   :  { %14 = vsyncpa [#allocation6], 0 }
   0x3   :  { %15 = vsyncpa [#allocation4], 0 }
   0x4   :  { %17 = vsyncpa [#allocation4 + $0x1], 0 }
   0x5   :  { %18 = vsyncpa [#allocation9], 0 }
   0x6   :  { %20 = vsyncpa [#allocation9 + $0x1], 0  ;;  %s1059_s18 = smov 0   ;;  %s1061_s19 = smov 0  }
   0x7   :  { %s1063_s20 = smov 0   ;;  %s1065_s21 = smov 0  }
   0x8   :  { %s1067_s22 = smov 0   ;;  %s1069_s23 = smov 0  }
   0x9 LB: > { %s1090_s24 = sadd.s32 4294967295, %s1006_s23   ;;  %s1397_s25 = sadd.s32 4294967294, %s1006_s23   ;;  %s1006_s23 = sphi %s1069_s23, %s26_s23   ;;  %s1002_s22 = sphi %s1067_s22, %s1419_s22   ;;  %s998_s21 = sphi %s1065_s21, %s1418_s21   ;;  %s994_s20 = sphi %s1063_s20, %s1417_s20   ;;  %s990_s19 = sphi %s1061_s19, %s1416_s19   ;;  %s986_s18 = sphi %s1059_s18, %s1415_s18  }
   0xa   : > { %p60_p0 = scmp.ne.s32.totalorder %s990_s19, %s986_s18  ;;  %p1394_p1 = scmp.eq.s32.totalorder %s1090_s24, 0 }
   0xb   : > { %p134_p3 = scmp.eq.s32.totalorder %s1397_s25, 1  ;;  %p648_p5 = scmp.ge.s32.totalorder %s1006_s23, 1 }
   0xc   : > { %p1101_p4 = por %p1394_p1, %p60_p0  ;;  %p197_p7 = scmp.lt.s32.totalorder %s1006_s23, 3 }
   0xd   : > { %p1106_p6 = por %p134_p3, %p60_p0  ;;  %s1008_s29 = smov [#allocation5]  }
   0xe   : > { %s1398_s26 = scalar_select %p1101_p4, 1, 0 }
   0xf   : > { %s1399_s27 = scalar_select %p1106_p6, 1, 0 }
  0x10   : > { %p1111_p8 = pnand %p648_p5, %p197_p7  ;;  %s209_s30 = sshll.u32 %s1008_s29, 4  ;;  %s210_s30 = int_to_ptr.vmem [resolvable:$true] %s209_s30 }
  0x11   : > { %s38_s7 = sadd.s32 1, %s1002_s22  ;;  %s802_s10 = scalar_lea.hbm %s1389_s1, 256 }
  0x12   : > { %s1400_s28 = scalar_select %p1111_p8, 1, 0 }
  0x13   : > { %p713_p9 = pneg %p1111_p8  ;;  %p803_p12 = scmp.ne.s32.totalorder %s1389_s1, %s802_s10 }
  0x14   : > { %p809_p5 = scmp.lt.u32.totalorder %s802_s10, %s1389_s1 }
  0x15   : > { %p1120_p11 = pnand %p713_p9, %p1394_p1 }
  0x17   : > { %p804_p13 = pneg %p1120_p11 }
  0x19   : > { %p805_p0 = pnand %p804_p13, %p803_p12 }
  0x1b   : > { %p806_p3 = pneg %p805_p0 }
  0x1d   : > { %p811_p7 = pnand %p809_p5, %p806_p3 }
  0x1f   : > { %814 = shalt.err (!%p811_p7)
}
  0x20   : > { %s815_s15 = scalar_lea.vmem %s210_s30, 256  ;;  %p823_p2 = scmp.lt.s32.totalorder %s210_s30, %s210_s30 }
  0x21   : > { %p816_p9 = scmp.ne.s32.totalorder %s210_s30, %s815_s15  ;;  %p824_p6 = scmp.lt.s32.totalorder %s815_s15, %s815_s15 }
  0x23   : > { %p818_p10 = pnand %p816_p9, %p804_p13  ;;  %p825_p4 = por %p824_p6, %p823_p2 }
  0x25   : > { %p819_p1 = pneg %p818_p10 }
  0x27   : > { %p826_p8 = pnand %p825_p4, %p819_p1 }
  0x29   : > { %829 = shalt.err (!%p826_p8)
}
  0x2a   : > { %s1009_s16 = smov 64   ;;  %s1010_s17 = smov 4  }
  0x2b   : > { %716 = dma.hbm_to_vmem [thread:$0]  (!%p1120_p11), %s1389_s1, 256, %s210_s30, [#allocation6], %s1009_s16, %s1009_s16, %s1010_s17  }
  0x2c   : > { %p40_p1 = scmp.ge.s32.totalorder %s38_s7, 2  ;;  %s47_s9 = sadd.s32 1, %s994_s20 }
  0x2d   : > { %p54_p2 = scmp.ne.s32.totalorder %s994_s20, %s990_s19  ;;  %p55_p4 = scmp.eq.s32.totalorder %s1006_s23, 0 }
  0x2e   : > { %s1421_s7 = smov (%p40_p1, %s38_s7), 0  ;;  %p1403_p8 = scmp.eq.s32.totalorder %s1090_s24, 1 }
  0x2f   : > { %p1147_p6 = por %p55_p4, %p54_p2  ;;  %s42_s6 = ssub.s32 %s1002_s22, %s1421_s7 }
  0x30   : > { %p1153_p10 = por %p1403_p8, %p54_p2  ;;  %p732_p12 = scmp.lt.s32.totalorder %s1006_s23, 2 }
  0x31   : > { %p45_p11 = scmp.eq.s32.totalorder %s42_s6, 0  ;;  %s226_s30 = sand.u32 1, %s994_s20  }
  0x32   : > { %s651_s12 = sshll.u32 %s226_s30, 3  ;;  %s652_s14 = sshll.u32 %s1002_s22, 7 }
  0x33   : > { %s1162_s13 = scalar_select %p45_p11, %s994_s20, %s47_s9  }
  0x34   : > { %s1168_s17 = scalar_lea.hbm %s1388_s0, %s652_s14  ;;  %s230_s29 = scalar_lea.vmem [#allocation2], %s651_s12 }
  0x35   : > { %s238_s8 = sshll.u32 %s230_s29, 4  ;;  %p1174_p13 = pnand %p732_p12, %p1147_p6  ;;  %s1170_s8 = int_to_ptr.vmem [resolvable:$true] %s238_s8 }
  0x36   : > { %s227_s9 = scalar_lea.sflag [#allocation3], %s226_s30  ;;  %s830_s25 = scalar_lea.hbm %s1168_s17, 128 }
  0x37   : > { %p831_p0 = scmp.ne.s32.totalorder %s1168_s17, %s830_s25  ;;  %p832_p3 = pneg %p1174_p13 }
  0x38   : > { %s835_s15 = scalar_lea.hbm %s1388_s0, 256  ;;  %p836_p9 = scmp.lt.u32.totalorder %s1168_s17, %s1388_s0 }
  0x39   : > { %p833_p5 = pnand %p832_p3, %p831_p0  ;;  %p837_p1 = scmp.lt.u32.totalorder %s835_s15, %s830_s25 }
  0x3a   : > { %p839_p4 = scmp.lt.u32.totalorder %s830_s25, %s1168_s17 }
  0x3b   : > { %p834_p7 = pneg %p833_p5  ;;  %p838_p2 = por %p837_p1, %p836_p9 }
  0x3d   : > { %p840_p6 = por %p839_p4, %p838_p2 }
  0x3f   : > { %p841_p8 = pnand %p840_p6, %p834_p7 }
  0x41   : > { %844 = shalt.err (!%p841_p8)
}
  0x42   : > { %s845_s30 = scalar_lea.vmem %s1170_s8, 128  ;;  %s1011_s29 = smov [#allocation2]  }
  0x43   : > { %p846_p12 = scmp.ne.s32.totalorder %s1170_s8, %s845_s30  ;;  %s850_s12 = sshll.u32 %s1011_s29, 4  ;;  %s851_s12 = int_to_ptr.vmem [resolvable:$false] %s850_s12 }
  0x44   : > { %s852_s14 = scalar_lea.vmem %s851_s12, 256  ;;  %p853_p5 = scmp.lt.s32.totalorder %s1170_s8, %s851_s12 }
  0x45   : > { %p848_p11 = pnand %p846_p12, %p832_p3  ;;  %p854_p9 = scmp.lt.s32.totalorder %s852_s14, %s845_s30 }
  0x47   : > { %p849_p0 = pneg %p848_p11  ;;  %p855_p1 = por %p854_p9, %p853_p5 }
  0x49   : > { %p856_p2 = pnand %p855_p1, %p849_p0 }
  0x4b   : > { %859 = shalt.err (!%p856_p2)
}
  0x4c   : > { %720 = dma.hbm_to_vmem [thread:$0]  (!%p1174_p13), %s1168_s17, 128, %s1170_s8, %s227_s9  }
  0x4d   : > { %p1406_p7 = scmp.ne.s32.totalorder %s1400_s28, 0 }
  0x4e   : > { %s1206_s25 = sand.u32 (!%p1406_p7), 1, %s990_s19   ;;  %p1407_p3 = scmp.ne.s32.totalorder (!%p1406_p7), %s1398_s26, 0 }
  0x4f   : > { %247 = sbr.rel (%p1406_p7) target bundleno = 496 (0x1f0), region = 32  ;;  %s654_s15 = sshll.u32 (!%p1406_p7), %s1206_s25, 3 }
  0x50   : > { %s250_s10 = scalar_lea.sflag (!%p1406_p7), [#allocation3], %s1206_s25  ;;  %s253_s16 = scalar_lea.vmem (!%p1406_p7), [#allocation2], %s654_s15 }
  0x56   : > { %969 = dma.done.wait (%p1407_p3), %s250_s10, 128  }
  0x57   : > { %971 = vsyncadd (%p1407_p3), %s250_s10, 4294967168  ;;  %p1408_p4 = scmp.eq.s32.totalorder %s1090_s24, 0 }
  0x59   : > { %973 = dma.done.wait (%p1408_p4), [#allocation6], 256   ;;  %p1409_p13 = pmov %p1408_p4 }
  0x5a   : > { %v1012_v0 = vmov 0.0   ;;  %vm1013_vm0 = vmmov 0   ;;  %v800_v1 = vld [vmem:[#allocation5] sm:$0xff]   ;;  %v801_v2 = vld [vmem:[#allocation5 + $0x8] sm:$0xff]   ;;  %v295_v3 = vld [vmem:[%s253_s16] sm:$0xff]  ;;  %vm320_vm1 = vcmask 261120  }
  0x5b   : > { %975 = vsyncadd (%p1409_p13), [#allocation6], 4294967040  ;;  %693 = vmatprep.subr.bf16.mxu0 %v1012_v0  ;;  %697 = vmatprep.mubr.msk.bf16.mxu0 %vm1013_vm0, %v1012_v0  ;;  %v296_v4 = vpack.c.bf16 %v295_v3, %v295_v3  ;;  %v659_v5 = vld [vmem:[%s1390_s2] ss:$0 sm:$0xff]  ;;  %s1222_s17 = sshll.u32 %s1206_s25, 4  ;;  %vm366_vm2 = vcmask 60416  }
  0x5c   : > { %694 = vmatpush3.bf16.msra.mxu0 %v800_v1  ;;  %s1014_s8 = smov 80   ;;  %s1015_s6 = smov 96  }
  0x5d   : > { %695 = vmatprep.subr.bf16.mxu0 %v1012_v0  ;;  %s1225_s9 = scalar_lea.vmem [#allocation7], %s1222_s17  ;;  %s1016_s30 = smov 72  }
  0x5e   : > { %s1017_s29 = smov 88   ;;  %s1018_s12 = smov 64  }
  0x5f   : > { %s1019_s14 = smov 120   ;;  %s1020_s15 = smov 56  }
  0x60   : > { %696 = vmatpush3.bf16.msra.mxu0 %v801_v2  ;;  %s1021_s10 = smov 112   ;;  %s1022_s16 = smov 48  }
  0x61   : > { %s1023_s26 = smov 104   ;;  %s1024_s28 = smov 40  }
  0x63   : > { %698 = vmatmul.mubr.msk.bf16.vlgmr.msra.gmra.mrb[0].mxu0 %vm320_vm1, %v296_v4 }
 0x136   : > { %v358_v6 = vpop.f32.mrb[0].mxu0 }
 0x137   : > { %v359_v7 = vadd.f32 %v659_v5, %v358_v6  ;;  %v699_v8 = vpop.f32.mrb[1].mxu0 }
 0x138   : > { %v361_v9 = vpop.f32.mrb[2].mxu0 }
 0x139   : > { %v364_v10 = vmul.f32 0.35355338, %v359_v7  ;;  %v685_v11 = vpack.c.bf16 %v359_v7, %v359_v7  ;;  %v700_v12 = vpop.f32.mrb[3].mxu0 }
 0x13b   : > { %v365_v13 = vpack.c.bf16 %v364_v10, %v364_v10  ;;  %403 = vrot.lane.b32.xlu1 %v685_v11, %s1014_s8  ;;  %372 = vrot.lane.b32.xlu0 %v685_v11, %s1015_s6  ;;  %s286_s8 = scalar_lea.vmem [#allocation8], %s1222_s17 }
 0x13c   : > { %s470_s6 = sshll.u32 %s286_s8, 4  ;;  %s1237_s6 = int_to_ptr.vmem [resolvable:$true] %s470_s6 }
 0x13d   : > { %367 = vst.msk [vmem:[%s1225_s9] sm:$0xf] %vm366_vm2, %v365_v13 }
 0x13f   : > { %418 = vrot.lane.b32.xlu1 %v685_v11, %s1016_s30  ;;  %388 = vrot.lane.b32.xlu0 %v685_v11, %s1017_s29  ;;  %s433_s30 = sand.u32 1, %s1090_s24   ;;  %s1233_s29 = sshll.u32 %s998_s21, 8 }
 0x140   : > { %s1247_s21 = scalar_lea.sflag [#allocation9], %s433_s30  ;;  %s860_s24 = scalar_lea.vmem %s1237_s6, 256 }
 0x141   : > { %p861_p6 = scmp.ne.s32.totalorder %s1237_s6, %s860_s24 }
 0x143   : > { %376 = vrot.lane.b32.xlu0 %v685_v11, %s1018_s12  ;;  %383 = vrot.lane.b32.xlu1 %v365_v13, %s1019_s14  ;;  %p862_p8 = pnand %p861_p6, %p1153_p10 }
 0x145   : > { %p863_p12 = pneg %p862_p8 }
 0x147   : > { %393 = vrot.lane.b32.xlu0 %v685_v11, %s1020_s15  ;;  %398 = vrot.lane.b32.xlu1 %v365_v13, %s1021_s10  ;;  %s1243_s10 = scalar_lea.hbm %s1392_s4, %s1233_s29 }
 0x14b   : > { %408 = vrot.lane.b32.xlu0 %v685_v11, %s1022_s16  ;;  %413 = vrot.lane.b32.xlu1 %v365_v13, %s1023_s26  ;;  %s1025_s16 = smov [#allocation8]  }
 0x14c   : > { %s864_s26 = sshll.u32 %s1025_s16, 4  ;;  %s865_s26 = int_to_ptr.vmem [resolvable:$false] %s864_s26 }
 0x14d   : > { %p867_p11 = scmp.lt.s32.totalorder %s1237_s6, %s865_s26 }
 0x14f   : > { %423 = vrot.lane.b32.xlu0 %v685_v11, %s1024_s28  ;;  %s866_s28 = scalar_lea.vmem %s865_s26, 512 }
 0x150   : > { %p868_p0 = scmp.lt.s32.totalorder %s866_s28, %s860_s24 }
 0x152   : > { %p869_p5 = por %p868_p0, %p867_p11 }
 0x154   : > { %p870_p9 = pnand %p869_p5, %p863_p12 }
 0x1ad   : > { %v404_v14 = vpop.permute.xlu1 %403  ;;  %v373_v15 = vpop.permute.xlu0 %372 }
 0x1ae   : > { %669 = vst.msk [vmem:[%s286_s8 + $0x8] sm:$0xf] %vm366_vm2, %v404_v14  ;;  %375 = vst.msk [vmem:[%s286_s8] sm:$0xf] %vm366_vm2, %v373_v15 }
 0x1b1   : > { %v419_v16 = vpop.permute.xlu1 %418  ;;  %v389_v17 = vpop.permute.xlu0 %388 }
 0x1b2   : > { %672 = vst.msk [vmem:[%s286_s8 + $0xc] sm:$0xf] %vm366_vm2, %v419_v16  ;;  %666 = vst.msk [vmem:[%s286_s8 + $0x4] sm:$0xf] %vm366_vm2, %v389_v17 }
 0x1b3   : > { %873 = shalt.err (!%p870_p9)
}
 0x1b4   : > { %s874_s8 = scalar_lea.hbm %s1243_s10, 256  ;;  %s878_s15 = scalar_lea.hbm %s1392_s4, 512 }
 0x1b5   : > { %p875_p1 = scmp.ne.s32.totalorder %s1243_s10, %s874_s8  ;;  %p879_p3 = scmp.lt.u32.totalorder %s1243_s10, %s1392_s4 }
 0x1b6   : > { %p880_p4 = scmp.lt.u32.totalorder %s878_s15, %s874_s8  ;;  %p882_p6 = scmp.lt.u32.totalorder %s874_s8, %s1243_s10 }
 0x1b7   : > { %p876_p2 = pnand %p875_p1, %p1153_p10 }
 0x1b8   : > { %p881_p13 = por %p880_p4, %p879_p3 }
 0x1b9   : > { %p877_p7 = pneg %p876_p2 }
 0x1ba   : > { %p883_p8 = por %p882_p6, %p881_p13 }
 0x1bc   : > { %p884_p12 = pnand %p883_p8, %p877_p7 }
 0x1be   : > { %887 = shalt.err (!%p884_p12)
}
 0x1bf   : > { %s1026_s24 = smov 4   ;;  %v377_v18 = vpop.permute.xlu0 %376  ;;  %v384_v19 = vpop.permute.xlu1 %383  ;;  %s1275_s28 = scalar_lea.vmem [#allocation10], %s1222_s17 }
 0x1c0   : > { %708 = dma.vmem_to_hbm [thread:$0]  (%p1153_p10), %s1237_s6, 256, %s1243_s10, %s1247_s21, %s1018_s12, %s1018_s12, %s1026_s24  }
 0x1c1   : > { %379 = vst.msk [vmem:[%s1275_s28] sm:$0xf] %vm366_vm2, %v377_v18  ;;  %665 = vst.msk [vmem:[%s1225_s9 + $0x4] sm:$0xf] %vm366_vm2, %v384_v19  ;;  %s453_s8 = sshll.u32 %s1225_s9, 4  ;;  %s1292_s10 = scalar_lea.hbm %s1391_s3, %s1233_s29  ;;  %s1286_s8 = int_to_ptr.vmem [resolvable:$true] %s453_s8 }
 0x1c2   : > { %s888_s15 = scalar_lea.vmem %s1286_s8, 256  ;;  %s1027_s16 = smov [#allocation7]  }
 0x1c3   : > { %v394_v20 = vpop.permute.xlu0 %393  ;;  %v399_v21 = vpop.permute.xlu1 %398  ;;  %p889_p11 = scmp.ne.s32.totalorder %s1286_s8, %s888_s15  ;;  %s892_s26 = sshll.u32 %s1027_s16, 4  ;;  %s893_s26 = int_to_ptr.vmem [resolvable:$false] %s892_s26 }
 0x1c4   : > { %667 = vst.msk [vmem:[%s1275_s28 + $0x4] sm:$0xf] %vm366_vm2, %v394_v20  ;;  %668 = vst.msk [vmem:[%s1225_s9 + $0x8] sm:$0xf] %vm366_vm2, %v399_v21  ;;  %s894_s17 = scalar_lea.vmem %s893_s26, 512  ;;  %p895_p9 = scmp.lt.s32.totalorder %s1286_s8, %s893_s26 }
 0x1c5   : > { %p890_p0 = pnand %p889_p11, %p1153_p10  ;;  %p896_p1 = scmp.lt.s32.totalorder %s894_s17, %s888_s15 }
 0x1c7   : > { %v409_v22 = vpop.permute.xlu0 %408  ;;  %v414_v23 = vpop.permute.xlu1 %413  ;;  %p891_p5 = pneg %p890_p0  ;;  %p897_p2 = por %p896_p1, %p895_p9 }
 0x1c8   : > { %670 = vst.msk [vmem:[%s1275_s28 + $0x8] sm:$0xf] %vm366_vm2, %v409_v22  ;;  %671 = vst.msk [vmem:[%s1225_s9 + $0xc] sm:$0xf] %vm366_vm2, %v414_v23 }
 0x1c9   : > { %p898_p7 = pnand %p897_p2, %p891_p5 }
 0x1cb   : > { %901 = shalt.err (!%p898_p7)
}
 0x1cc   : > { %s902_s9 = scalar_lea.hbm %s1292_s10, 256  ;;  %s906_s16 = scalar_lea.hbm %s1391_s3, 512 }
 0x1cd   : > { %p903_p3 = scmp.ne.s32.totalorder %s1292_s10, %s902_s9  ;;  %p907_p6 = scmp.lt.u32.totalorder %s1292_s10, %s1391_s3 }
 0x1ce   : > { %p908_p8 = scmp.lt.u32.totalorder %s906_s16, %s902_s9  ;;  %p910_p11 = scmp.lt.u32.totalorder %s902_s9, %s1292_s10 }
 0x1cf   : > { %p904_p4 = pnand %p903_p3, %p1153_p10 }
 0x1d0   : > { %p909_p12 = por %p908_p8, %p907_p6 }
 0x1d1   : > { %p905_p13 = pneg %p904_p4 }
 0x1d2   : > { %p911_p0 = por %p910_p11, %p909_p12 }
 0x1d4   : > { %p912_p5 = pnand %p911_p0, %p905_p13 }
 0x1d6   : > { %915 = shalt.err (!%p912_p5)
}
 0x1d7   : > { %s1410_s15 = scalar_lea.sflag [#allocation4], %s1206_s25  ;;  %s1411_s30 = sshll.u32 %s1275_s28, 4  ;;  %v424_v24 = vpop.permute.xlu0 %423  ;;  %s1328_s30 = int_to_ptr.vmem [resolvable:$true] %s1411_s30 }
 0x1d8   : > { %707 = dma.vmem_to_hbm [thread:$0]  (%p1153_p10), %s1286_s8, 256, %s1292_s10, %s1410_s15, %s1018_s12, %s1018_s12, %s1026_s24  }
 0x1d9   : > { %s1334_s9 = scalar_lea.hbm %s1393_s5, %s1233_s29  ;;  %673 = vst.msk [vmem:[%s1275_s28 + $0xc] sm:$0xf] %vm366_vm2, %v424_v24  ;;  %s916_s25 = scalar_lea.vmem %s1328_s30, 256 }
 0x1da   : > { %p917_p9 = scmp.ne.s32.totalorder %s1328_s30, %s916_s25  ;;  %s1028_s8 = smov [#allocation10]  }
 0x1db   : > { %s920_s10 = sshll.u32 %s1028_s8, 4  ;;  %s921_s10 = int_to_ptr.vmem [resolvable:$false] %s920_s10 }
 0x1dc   : > { %p918_p1 = pnand %p917_p9, %p1153_p10  ;;  %s922_s6 = scalar_lea.vmem %s921_s10, 512 }
 0x1dd   : > { %p923_p7 = scmp.lt.s32.totalorder %s1328_s30, %s921_s10  ;;  %p924_p3 = scmp.lt.s32.totalorder %s922_s6, %s916_s25 }
 0x1de   : > { %p919_p2 = pneg %p918_p1 }
 0x1df   : > { %p925_p4 = por %p924_p3, %p923_p7 }
 0x1e1   : > { %p926_p13 = pnand %p925_p4, %p919_p2 }
 0x1e3   : > { %929 = shalt.err (!%p926_p13)
}
 0x1e4   : > { %s930_s29 = scalar_lea.hbm %s1334_s9, 256  ;;  %s934_s26 = scalar_lea.hbm %s1393_s5, 512 }
 0x1e5   : > { %p931_p6 = scmp.ne.s32.totalorder %s1334_s9, %s930_s29  ;;  %p935_p11 = scmp.lt.u32.totalorder %s1334_s9, %s1393_s5 }
 0x1e6   : > { %p936_p0 = scmp.lt.u32.totalorder %s934_s26, %s930_s29  ;;  %p938_p9 = scmp.lt.u32.totalorder %s930_s29, %s1334_s9 }
 0x1e7   : > { %p932_p8 = pnand %p931_p6, %p1153_p10 }
 0x1e8   : > { %p937_p5 = por %p936_p0, %p935_p11 }
 0x1e9   : > { %p933_p12 = pneg %p932_p8 }
 0x1ea   : > { %p939_p1 = por %p938_p9, %p937_p5 }
 0x1ec   : > { %p940_p2 = pnand %p939_p1, %p933_p12 }
 0x1ee   : > { %943 = shalt.err (!%p940_p2)
}
 0x1ef   : > { %709 = dma.vmem_to_hbm [thread:$0]  (%p1153_p10), %s1328_s30, 256, %s1334_s9, %s1247_s21, %s1018_s12, %s1018_s12, %s1026_s24  }
 0x1f0 PF: > { %s502_s17 = sand.u32 1, %s986_s18   ;;  %p1412_p7 = scmp.ne.s32.totalorder %s1399_s27, 0 }
 0x1f1   : > { %p1413_p3 = scmp.ge.s32.totalorder %s1006_s23, 2  ;;  %s503_s25 = scalar_lea.sflag [#allocation4], %s502_s17 }
 0x1f3   : > { %p722_p4 = pnand %p1413_p3, %p1412_p7 }
 0x1f5   : > { %977 = dma.done.wait (!%p722_p4), %s503_s25, 256  }
 0x1f6   : > { %979 = vsyncadd (!%p722_p4), %s503_s25, 4294967040  ;;  %s1414_s11 = sadd.s32 4294967294, %s1006_s23  }
 0x1f7   : > { %s511_s8 = sand.u32 1, %s1414_s11  }
 0x1f8   : > { %s512_s10 = scalar_lea.sflag [#allocation9], %s511_s8 }
 0x1f9   : > { %981 = dma.done.wait (!%p722_p4), %s512_s10, 512  }
 0x1fa   : > { %983 = vsyncadd (!%p722_p4), %s512_s10, 4294966784  ;;  %s26_s23 = sadd.s32 1, %s1006_s23   ;;  %s1415_s18 = smov %s990_s19 }
 0x1fb   : > { %p23_p10 = scmp.ge.s32.totalorder %s26_s23, 4   ;;  %s1416_s19 = smov %s994_s20 }
 0x1fc   : > { %s1417_s20 = smov %s1162_s13  ;;  %s1418_s21 = smov %s1002_s22 }
 0x1fd   : > { %s1419_s22 = smov %s1421_s7  ;;  %25 = sbr.rel (!%p23_p10) target bundleno = 9 (0x9), region = 122 }
 0x204   :  { %526 = vsyncpa [#allocation3], 1 }
 0x205   :  { %528 = vsyncpa [#allocation3 + $0x1], 1 }
 0x206   :  { %529 = vsyncpa [#allocation6], 1 }
 0x207   :  { %530 = vsyncpa [#allocation4], 1 }
 0x208   :  { %532 = vsyncpa [#allocation4 + $0x1], 1 }
 0x209   :  { %533 = vsyncpa [#allocation9], 1 }
 0x20a   :  { %535 = vsyncpa [#allocation9 + $0x1], 1 }

</bundles_post_ra>
